<compile_context>
chip_gen: v7x
topology: tpu7x:2x2x1
jax: 0.10.0
libtpu: 0.0.40
codegen_flags: <defaults>
</compile_context>

<pallas_src>
import functools

import jax
import jax.numpy as jnp
import numpy as np
from jax.experimental import pallas as pl
from jax.experimental.pallas import tpu as pltpu


_C_CHUNK = 256            # channel-contraction chunk (multiple of 8 and 128)
_S_MIN, _S_CAP = 128, 256  # target window for the output-tile lane width S = TH*Ws


# --------------------------------------------------------------------------- kernel


def _control_project_kernel(x_ref, p_ref, w_ref, o_ref):
    """Fused AvgPool2d(scale) + 1x1 Conv2d for one (sample, row-tile).

    x_ref: (1, C, L)      raw NCHW pixels of TH*scale input rows (L = TH*scale*W)
    p_ref: (L, S)         constant pooling operator, entries 1/(scale*scale)
    w_ref: (C_out, C)     1x1-conv weight, 2-D, in the compute dtype
    o_ref: (1, C_out, S)  S = TH*Ws pooled output pixels (lane-dense last dim)
    """
    C = x_ref.shape[1]
    w = w_ref[...]
    cdt = w.dtype
    if C <= _C_CHUNK:
        # Spatial average pooling on the MXU (f32 accumulation), then channel mix.
        pooled = jnp.dot(x_ref[0], p_ref[...],
                         preferred_element_type=jnp.float32)          # (C, S)
        out = jnp.dot(w, pooled.astype(cdt),
                      preferred_element_type=jnp.float32)             # (C_out, S)
    else:
        # Large C: chunk the channel contraction so the f32 "pooled" intermediate stays a
        # small (chunk, S) slab instead of a (C, S) tile that spills through VMEM.
        out = jnp.zeros((w.shape[0], o_ref.shape[2]), jnp.float32)
        for c0 in range(0, C, _C_CHUNK):
            c1 = min(C, c0 + _C_CHUNK)
            pooled_c = jnp.dot(x_ref[0, c0:c1, :], p_ref[...],
                               preferred_element_type=jnp.float32)    # (chunk, S)
            out = out + jnp.dot(w[:, c0:c1], pooled_c.astype(cdt),
                                preferred_element_type=jnp.float32)   # (C_out, S)
    o_ref[0] = out.astype(o_ref.dtype)


# --------------------------------------------------------------------------- tiling


def _round_up(v, m):
    return ((v + m - 1) // m) * m


def _vmem_capacity_bytes():
    """Physical VMEM per TensorCore; falls back to the v5e/v6e value if the query fails."""
    try:
        info = pltpu.get_tpu_info()
        cap = getattr(info, "vmem_capacity_bytes", None)
        if cap:
            return int(cap)
    except Exception:
        pass
    return 128 * 2**20


def _tile_vmem_bytes(th, *, Ws, W, scale, C, C_out, itemsize):
    """(8,128)-padded VMEM footprint of one grid step (operands double-buffered)."""
    L, S = th * scale * W, th * Ws
    x_t = _round_up(C, 8) * _round_up(L, 128)        # input tile
    p_t = _round_up(L, 8) * _round_up(S, 128)        # pooling operator
    w_t = _round_up(C_out, 8) * _round_up(C, 128)    # 1x1 weight
    o_t = _round_up(C_out, 8) * _round_up(S, 128)    # output tile
    dbuf = 2 * itemsize * (x_t + p_t + w_t + o_t)
    # f32 intermediates (pooled chunk + conv accumulator), single-buffered.
    inter = 4 * (_round_up(min(C, _C_CHUNK), 8) + _round_up(C_out, 8)) * _round_up(S, 128)
    return dbuf + inter


def _pick_tile_rows(*, Hs, Ws, W, scale, C, C_out, itemsize, n_batch, budget_bytes):
    """Pick TH = output rows per tile.

    Objective / constraints:
      * TH divides Hs (no partial blocks) and blocks obey Mosaic's (8,128) rule.
      * FLOP-aware: with the dense pooling operator the pooling MACs per input byte scale
        with S = TH*Ws, so keep S in [_S_MIN, _S_CAP] (smallest lane-dense S wins) — S≈128
        stays under the HBM roofline even on v5e's weak MXU while stores stay unmasked.
      * Fit a generation-aware VMEM budget.
      * Keep >= 2 grid steps so both v7x TensorCores get work.
    """

    def legal(th):
        if th == Hs:
            return True
        return (th * scale * W) % 128 == 0 and (th * Ws) % 128 == 0

    kw = dict(Ws=Ws, W=W, scale=scale, C=C, C_out=C_out, itemsize=itemsize)
    divisors = [th for th in range(1, Hs + 1) if Hs % th == 0 and legal(th)]
    fits = [th for th in divisors if _tile_vmem_bytes(th, **kw) <= budget_bytes]
    if not fits:
        # TODO(synk): tile the channel/contraction dim via an extra "arbitrary" grid axis
        # instead of relying on vmem_limit headroom when even the smallest tile overflows.
        fits = [min(divisors)]

    in_window = [th for th in fits if _S_MIN <= th * Ws <= _S_CAP]
    if in_window:
        th = min(in_window)                       # smallest lane-dense S: least MXU waste
    else:
        under = [th for th in fits if th * Ws < _S_MIN]
        th = max(under) if under else min(fits)   # as lane-dense as possible / smallest S

    # Guarantee >= 2 grid steps on a parallel axis (v7x: 2 TensorCores per chip).
    if n_batch * (Hs // th) < 2:
        smaller = [t for t in fits if t < th and Hs // t >= 2]
        if smaller:
            dense_smaller = [t for t in smaller if t * Ws >= _S_MIN]
            th = max(dense_smaller) if dense_smaller else max(smaller)

    return th, _tile_vmem_bytes(th, **kw)


@functools.lru_cache(maxsize=64)
def _pool_matrix_np(th, scale, W, Ws):
    """Per-tile pooling operator P[l, s] = 1/scale^2 iff flat input pixel l falls inside the
    scale x scale window of flat output pixel s.  Built once on the host and cached."""
    L, S = th * scale * W, th * Ws
    li = np.arange(L)
    si = np.arange(S)
    same_row = (li[:, None] // W) // scale == (si[None, :] // Ws)
    same_col = (li[:, None] % W) // scale == (si[None, :] % Ws)
    return (same_row & same_col).astype(np.float32) / float(scale * scale)


# --------------------------------------------------------------------------- pallas_call


def _fused_pool_conv(x_flat, p_mat, w2d, *, th, Hs, Ws, vmem_estimate, phys_vmem):
    """x_flat: (N, C, H*W); p_mat: (L, S); w2d: (C_out, C) -> (N, C_out, Hs*Ws)."""
    N, C, _ = x_flat.shape
    C_out = w2d.shape[0]
    L, S = p_mat.shape
    grid = (N, Hs // th)
    itemsize = x_flat.dtype.itemsize

    # Scoped-VMEM request close to the actual footprint (v5e: no over-reservation), capped
    # at ~75% of physical VMEM (v7x: 64 MiB per TensorCore).
    vmem_limit = int(min((phys_vmem * 3) // 4,
                         max(16 * 2**20, vmem_estimate + 4 * 2**20)))

    steps = grid[0] * grid[1]
    flops = steps * (2 * C * L * S + 2 * C_out * C * S)
    bytes_accessed = (x_flat.size * itemsize + N * C_out * Hs * Ws * itemsize
                      + p_mat.size * p_mat.dtype.itemsize + w2d.size * w2d.dtype.itemsize)

    return pl.pallas_call(
        _control_project_kernel,
        out_shape=jax.ShapeDtypeStruct((N, C_out, Hs * Ws), x_flat.dtype),
        grid_spec=pltpu.PrefetchScalarGridSpec(
            num_scalar_prefetch=0,
            grid=grid,
            in_specs=[
                # Raw NCHW row-slab: lane dim = L = TH*scale*W (contiguous in HBM).
                pl.BlockSpec((1, C, L), lambda n, h: (n, 0, h)),
                # Grid-invariant pooling operator / weight: constant index_map, fetched once
                # and VMEM-resident for the whole grid.
                pl.BlockSpec((L, S), lambda n, h: (0, 0)),
                pl.BlockSpec((C_out, C), lambda n, h: (0, 0)),
            ],
            out_specs=pl.BlockSpec((1, C_out, S), lambda n, h: (n, 0, h)),
        ),
        compiler_params=pltpu.CompilerParams(
            dimension_semantics=("parallel", "parallel"),
            vmem_limit_bytes=vmem_limit,
        ),
        cost_estimate=pl.CostEstimate(flops=int(flops), transcendentals=0,
                                      bytes_accessed=int(bytes_accessed)),
    )(x_flat, p_mat, w2d)


# --------------------------------------------------------------------------- wrapper


def control_project(hidden_states, weight, *, scale=8, is_empty=False):
    """JAX/Pallas port of ControlProject.forward.

    hidden_states: (B, C, H, W) or (B, F, C, H, W), NCHW (PyTorch convention).
    weight:        (C_out, C_in, 1, 1) 1x1 conv weight (no bias).
    """
    assert scale and (scale & (scale - 1)) == 0, "scale must be a power of two"

    if is_empty:
        shape = list(hidden_states.shape)
        shape[-2] = shape[-2] // scale
        shape[-1] = shape[-1] // scale
        return jnp.zeros(shape, dtype=hidden_states.dtype)

    five_d = hidden_states.ndim == 5
    if five_d:
        B, F, C, H, W = hidden_states.shape
        x = hidden_states.reshape(B * F, C, H, W)
    else:
        B, C, H, W = hidden_states.shape
        x = hidden_states

    assert H % scale == 0 and W % scale == 0, "spatial dims must be divisible by scale"
    N = x.shape[0]
    Hs, Ws = H // scale, W // scale
    C_out, C_in = weight.shape[0], weight.shape[1]
    assert C_in == C

    # 1x1 weight as a (C_out, C_in) matrix in the activation dtype (bf16 stays bf16 on the
    # MXU; accumulation is f32 in-kernel).  The module always has C_out == C_in, so the
    # pool-then-conv operand order is the cheaper one.
    w2d = weight.reshape(C_out, C_in).astype(x.dtype)

    phys_vmem = _vmem_capacity_bytes()
    budget = max(8 * 2**20, int(phys_vmem * 0.35))   # ~22 MiB on v7x, ~45 MiB on v5e/v6e
    th, vmem_est = _pick_tile_rows(Hs=Hs, Ws=Ws, W=W, scale=scale, C=C, C_out=C_out,
                                   itemsize=x.dtype.itemsize, n_batch=N,
                                   budget_bytes=budget)

    # Host-cached pooling operator; 1/scale^2 is an exact power of two so the cast to the
    # activation dtype is lossless.
    p_mat = jnp.asarray(_pool_matrix_np(th, scale, W, Ws), dtype=x.dtype)

    # Free (contiguous) view — no transpose, no extra HBM traffic.
    x_flat = x.reshape(N, C, H * W)
    out_flat = _fused_pool_conv(x_flat, p_mat, w2d, th=th, Hs=Hs, Ws=Ws,
                                vmem_estimate=vmem_est, phys_vmem=phys_vmem)

    out = out_flat.reshape(N, C_out, Hs, Ws)         # free reshape, still NCHW
    if five_d:
        out = out.reshape(B, F, C_out, Hs, Ws)
    return out


# --------------------------------------------------------------------------- reference / test


def _reference(hidden_states, weight, *, scale):
    """Pure-JAX reference: AvgPool2d(scale, scale) then 1x1 conv, NCHW."""
    B, C, H, W = hidden_states.shape
    Hs, Ws = H // scale, W // scale
    pooled = hidden_states.reshape(B, C, Hs, scale, Ws, scale).mean(axis=(3, 5))
    w2d = weight.reshape(weight.shape[0], weight.shape[1])
    return jnp.einsum("oc,bchw->bohw", w2d, pooled)


if __name__ == "__main__":
    key = jax.random.PRNGKey(0)
    k_x, k_w, k_x2, k_w2 = jax.random.split(key, 4)

    # ---- small shapes consistent with the module --------------------------------------
    B, C, H, W = 2, 4, 16, 16
    scale = 8
    x = jax.random.normal(k_x, (B, C, H, W), dtype=jnp.float32)
    # NOTE: the PyTorch module zero-initializes the 1x1 conv weight (output would be
    # identically zero); a deterministic random weight is used so the kernel's compute
    # path is actually exercised — the forward-pass math is identical.
    w = jax.random.normal(k_w, (C, C, 1, 1), dtype=jnp.float32) * 0.1

    out = jax.block_until_ready(control_project(x, w, scale=scale))
    ref = _reference(x, w, scale=scale)
    assert out.shape == (B, C, H // scale, W // scale), out.shape
    assert jnp.allclose(out, ref, atol=1e-5, rtol=1e-5), "mismatch vs reference"

    # 5-D (B, F, C, H, W) path uses the same kernel after a free reshape.
    x5 = x.reshape(1, B, C, H, W)
    out5 = jax.block_until_ready(control_project(x5, w, scale=scale))
    assert out5.shape == (1, B, C, H // scale, W // scale)
    assert jnp.allclose(out5.reshape(B, C, H // scale, W // scale), ref,
                        atol=1e-5, rtol=1e-5), "5-D path mismatch vs reference"

    # is_empty path (pure-JAX zeros, matches torch.zeros semantics).
    empty = jax.block_until_ready(control_project(x, w, scale=scale, is_empty=True))
    assert empty.shape == (B, C, H // scale, W // scale)
    assert jnp.all(empty == 0)

    # ---- a shape that exercises the lane-dense (S = 128) tiling path ------------------
    B2, C2, H2, W2 = 1, 8, 64, 256
    x2 = jax.random.normal(k_x2, (B2, C2, H2, W2), dtype=jnp.float32)
    w2 = jax.random.normal(k_w2, (C2, C2, 1, 1), dtype=jnp.float32) * 0.1
    out2 = jax.block_until_ready(control_project(x2, w2, scale=scale))
    ref2 = _reference(x2, w2, scale=scale)
    assert out2.shape == (B2, C2, H2 // scale, W2 // scale)
    assert jnp.allclose(out2, ref2, atol=1e-4, rtol=1e-3), "lane-dense path mismatch"

    print("KERNEL_OK")
</pallas_src>

<mosaic_0001>
module attributes {stable_mosaic.version = 11 : i64} {
  func.func @_control_project_kernel(%arg0: i32, %arg1: i32, %arg2: memref<1x4x256xf32, #tpu.memory_space<vmem>>, %arg3: memref<256x4xf32, #tpu.memory_space<vmem>>, %arg4: memref<4x4xf32, #tpu.memory_space<vmem>>, %arg5: memref<1x4x4xf32, #tpu.memory_space<vmem>>) attributes {dimension_semantics = [#tpu.dimension_semantics<parallel>, #tpu.dimension_semantics<parallel>], iteration_bounds = array<i64: 2, 1>, scalar_prefetch = 0 : i64, scratch_operands = 0 : i64, tpu.core_type = #tpu.core_type<tc>, window_params = [{transform_indices = @transform_0, window_bounds = array<i64: 1, 4, 256>}, {pipeline_mode = #tpu.pipeline_mode<synchronous>, transform_indices = @transform_1, window_bounds = array<i64: 256, 4>}, {pipeline_mode = #tpu.pipeline_mode<synchronous>, transform_indices = @transform_2, window_bounds = array<i64: 4, 4>}, {transform_indices = @transform_3, window_bounds = array<i64: 1, 4, 4>}]} {
    %c0 = arith.constant 0 : index
    %c0_0 = arith.constant 0 : index
    %0 = vector.load %arg4[%c0, %c0_0] : memref<4x4xf32, #tpu.memory_space<vmem>>, vector<4x4xf32>
    %c0_1 = arith.constant 0 : index
    %c0_2 = arith.constant 0 : index
    %c0_3 = arith.constant 0 : index
    %1 = vector.load %arg2[%c0_1, %c0_2, %c0_3] : memref<1x4x256xf32, #tpu.memory_space<vmem>>, vector<1x4x256xf32>
    %2 = vector.shape_cast %1 : vector<1x4x256xf32> to vector<4x256xf32>
    %c0_4 = arith.constant 0 : index
    %c0_5 = arith.constant 0 : index
    %3 = vector.load %arg3[%c0_4, %c0_5] : memref<256x4xf32, #tpu.memory_space<vmem>>, vector<256x4xf32>
    %cst = arith.constant dense<0.000000e+00> : vector<4x4xf32>
    %4 = tpu.matmul %2, %3, %cst {dimension_numbers = #tpu.dot_dimension_numbers<[1], [0], [0], [1], [0, 0, 1, 1], [], []>} : vector<4x256xf32>, vector<256x4xf32>, vector<4x4xf32> -> vector<4x4xf32>
    %cst_6 = arith.constant dense<0.000000e+00> : vector<4x4xf32>
    %5 = tpu.matmul %0, %4, %cst_6 {dimension_numbers = #tpu.dot_dimension_numbers<[1], [0], [0], [1], [0, 0, 1, 1], [], []>} : vector<4x4xf32>, vector<4x4xf32>, vector<4x4xf32> -> vector<4x4xf32>
    %c0_7 = arith.constant 0 : index
    %c0_8 = arith.constant 0 : index
    %c0_9 = arith.constant 0 : index
    %6 = vector.load %arg5[%c0_7, %c0_8, %c0_9] : memref<1x4x4xf32, #tpu.memory_space<vmem>>, vector<1x4x4xf32>
    %7 = vector.shape_cast %6 : vector<1x4x4xf32> to vector<4x4xf32>
    %8 = vector.shape_cast %5 : vector<4x4xf32> to vector<1x4x4xf32>
    tpu.vector_store %arg5[%c0_7, %c0_8, %c0_9], %8 {strides = array<i32>} : memref<1x4x4xf32, #tpu.memory_space<vmem>>, vector<1x4x4xf32>,
    return
  }
  func.func @transform_0(%arg0: i32, %arg1: i32) -> (i32, i32, i32) {
    %c0_i32 = arith.constant 0 : i32
    %c0_i32_0 = arith.constant 0 : i32
    return %arg0, %c0_i32, %arg1 : i32, i32, i32
  }
  func.func @transform_1(%arg0: i32, %arg1: i32) -> (i32, i32) {
    %c0_i32 = arith.constant 0 : i32
    %c0_i32_0 = arith.constant 0 : i32
    %c0_i32_1 = arith.constant 0 : i32
    return %c0_i32, %c0_i32_0 : i32, i32
  }
  func.func @transform_2(%arg0: i32, %arg1: i32) -> (i32, i32) {
    %c0_i32 = arith.constant 0 : i32
    %c0_i32_0 = arith.constant 0 : i32
    %c0_i32_1 = arith.constant 0 : i32
    return %c0_i32, %c0_i32_0 : i32, i32
  }
  func.func @transform_3(%arg0: i32, %arg1: i32) -> (i32, i32, i32) {
    %c0_i32 = arith.constant 0 : i32
    %c0_i32_0 = arith.constant 0 : i32
    return %arg0, %c0_i32, %arg1 : i32, i32, i32
  }
}

</mosaic_0001>

<bundles_post_ra>
// kernel: tpu_custom_call.1
= control target key start
LH: loop header
LB: loop body
LE: loop exit
PB: predicated region body
PF: predicated region fallthrough
CT: control target
= control target key end

     0   :  { %8 = vsyncpa [#allocation3], 0  ;;  %s936_s0 = inlined_call_operand.vmem [shape: f32[2,4,256], index: 0, kind: input, shape index: {}]   ;;  %s937_s1 = inlined_call_operand.vmem [shape: f32[256,4], index: 1, kind: input, shape index: {}]   ;;  %s938_s2 = inlined_call_operand.vmem [shape: f32[4,4], index: 2, kind: input, shape index: {}]   ;;  %s939_s3 = inlined_call_operand.hbm [shape: f32[2,4,4], index: 3, kind: output, shape index: {}]  }
   0x1   :  { %10 = vsyncpa [#allocation3 + $0x1], 0  ;;  %s725_s12 = smov 0   ;;  %s727_s13 = smov 0  }
   0x2   :  { %s729_s14 = smov 0   ;;  %s731_s15 = smov 0  }
   0x3   :  { %s733_s16 = smov 0   ;;  %s735_s17 = smov 0  }
   0x4 LB: > { %s475_s18 = sadd.s32 4294967295, %s700_s17   ;;  %s476_s19 = sadd.s32 4294967294, %s700_s17   ;;  %s700_s17 = sphi %s735_s17, %s16_s17   ;;  %s696_s16 = sphi %s733_s16, %s946_s16   ;;  %s692_s15 = sphi %s731_s15, %s945_s15   ;;  %s688_s14 = sphi %s729_s14, %s944_s14   ;;  %s684_s13 = sphi %s727_s13, %s943_s13   ;;  %s680_s12 = sphi %s725_s12, %s942_s12  }
   0x5   : > { %s28_s20 = sadd.s32 1, %s696_s16  ;;  %s107_s21 = sadd.s32 1, %s688_s14 }
   0x6   : > { %p30_p0 = scmp.ge.s32.totalorder %s28_s20, 2  ;;  %p117_p1 = scmp.ne.s32.totalorder %s688_s14, %s684_s13 }
   0x7   : > { %p118_p2 = scmp.eq.s32.totalorder %s475_s18, 1  ;;  %p123_p3 = scmp.ne.s32.totalorder %s684_s13, %s680_s12 }
   0x8   : > { %s948_s20 = smov (%p30_p0, %s28_s20), 0  ;;  %p124_p5 = scmp.eq.s32.totalorder %s476_s19, 1 }
   0x9   : > { %p765_p4 = por %p118_p2, %p117_p1  ;;  %s102_s23 = ssub.s32 %s696_s16, %s948_s20 }
   0xa   : > { %p479_p6 = scmp.ge.s32.totalorder %s700_s17, 1  ;;  %p105_p7 = scmp.eq.s32.totalorder %s102_s23, 0 }
   0xb   : > { %p772_p8 = por %p124_p5, %p123_p3  ;;  %p161_p9 = scmp.lt.s32.totalorder %s700_s17, 3 }
   0xc   : > { %s778_s25 = scalar_select %p105_p7, %s688_s14, %s107_s21  }
   0xd   : > { %p162_p10 = pnand %p479_p6, %p161_p9 }
   0xe   : > { %v217_v0 = vld [vmem:[%s937_s1 + $0x80] sm:$0xff] (!%p162_p10)  ;;  %v218_v1 = vld [vmem:[%s937_s1 + $0x88] sm:$0xff] (!%p162_p10)  ;;  %p190_p11 = scmp.lt.s32.totalorder (!%p162_p10), %s692_s15, 1  ;;  %v219_v5 = vld [vmem:[%s937_s1 + $0x90] sm:$0xff] (!%p162_p10)  ;;  %v702_v50 = vmov (!%p162_p10), 0.0   ;;  %vm703_vm0 = vmmov (!%p162_p10), 0  }
   0xf   : > { %165 = sbr.rel (%p162_p10) target bundleno = 491 (0x1eb), region = 32  ;;  %v201_v2 = vld [vmem:[%s937_s1] sm:$0xff] (!%p162_p10)  ;;  %v532_v3 = vpack.c.bf16 (!%p162_p10), %v218_v1, %v217_v0  ;;  %v202_v4 = vld [vmem:[%s937_s1 + $0x8] sm:$0xff] (!%p162_p10)  ;;  %v220_v6 = vld [vmem:[%s937_s1 + $0x98] sm:$0xff] (!%p162_p10)  ;;  %527 = vmatprep.subr.mxu1 (!%p162_p10), %v702_v50  ;;  %529 = vmatprep.mubr.msk.f32.mxu1 (!%p162_p10), %vm703_vm0, %v702_v50  ;;  %vm310_vm1 = vcmask (!%p162_p10), 1043456   ;;  %vm306_vm2 = vcmask (!%p162_p10), 31744  }
  0x10   : > { %v534_v7 = vpack.c.bf16 (!%p162_p10), %v202_v4, %v201_v2  ;;  %v536_v8 = vpack.c.bf16 (!%p162_p10), %v220_v6, %v219_v5  ;;  %v203_v9 = vld [vmem:[%s937_s1 + $0x10] sm:$0xff] (!%p162_p10)  ;;  %v204_v10 = vld [vmem:[%s937_s1 + $0x18] sm:$0xff] (!%p162_p10)  ;;  %v221_v11 = vld [vmem:[%s937_s1 + $0xa0] sm:$0xff] (!%p162_p10)  ;;  %s186_s29 = sand.u32 (!%p162_p10), 1, %s684_s13   ;;  %s486_s5 = sshll.u32 (!%p162_p10), %s692_s15, 6  ;;  %vm384_vm3 = vcmask (!%p162_p10), 27648  }
  0x11   : > { %533 = vmatprep.subr.bf16.mxu0 (!%p162_p10), %v532_v3  ;;  %v222_v12 = vld [vmem:[%s937_s1 + $0xa8] sm:$0xff] (!%p162_p10)  ;;  %v538_v13 = vpack.c.bf16 (!%p162_p10), %v204_v10, %v203_v9  ;;  %v205_v15 = vld [vmem:[%s937_s1 + $0x20] sm:$0xff] (!%p162_p10)  ;;  %v223_v17 = vld [vmem:[%s937_s1 + $0xb0] sm:$0xff] (!%p162_p10)  ;;  %s480_s4 = sshll.u32 (!%p162_p10), %s186_s29, 2  ;;  %s889_s9 = scalar_lea.hbm (!%p162_p10), %s939_s3, %s486_s5 }
  0x12   : > { %535 = vmatpush3.bf16.msra.mxu0 (!%p162_p10), %v534_v7  ;;  %v540_v14 = vpack.c.bf16 (!%p162_p10), %v222_v12, %v221_v11  ;;  %v206_v16 = vld [vmem:[%s937_s1 + $0x28] sm:$0xff] (!%p162_p10)  ;;  %v224_v18 = vld [vmem:[%s937_s1 + $0xb8] sm:$0xff] (!%p162_p10)  ;;  %v207_v21 = vld [vmem:[%s937_s1 + $0x30] sm:$0xff] (!%p162_p10)  ;;  %s188_s6 = scalar_lea.vmem (!%p162_p10), [#allocation2], %s480_s4  ;;  %s387_s10 = scalar_lea.sflag (!%p162_p10), [#allocation3], %s186_s29 }
  0x13   : > { %537 = vmatprep.subr.bf16.mxu0 (!%p162_p10), %v536_v8  ;;  %v542_v19 = vpack.c.bf16 (!%p162_p10), %v206_v16, %v205_v15  ;;  %v544_v20 = vpack.c.bf16 (!%p162_p10), %v224_v18, %v223_v17  ;;  %v208_v22 = vld [vmem:[%s937_s1 + $0x38] sm:$0xff] (!%p162_p10)  ;;  %v225_v23 = vld [vmem:[%s937_s1 + $0xc0] sm:$0xff] (!%p162_p10)  ;;  %v226_v24 = vld [vmem:[%s937_s1 + $0xc8] sm:$0xff] (!%p162_p10) }
  0x14   : > { %v546_v27 = vpack.c.bf16 (!%p162_p10), %v208_v22, %v207_v21  ;;  %v548_v28 = vpack.c.bf16 (!%p162_p10), %v226_v24, %v225_v23  ;;  %v209_v29 = vld [vmem:[%s937_s1 + $0x40] sm:$0xff] (!%p162_p10)  ;;  %v210_v30 = vld [vmem:[%s937_s1 + $0x48] sm:$0xff] (!%p162_p10)  ;;  %v227_v31 = vld [vmem:[%s937_s1 + $0xd0] sm:$0xff] (!%p162_p10) }
  0x15   : > { %v228_v32 = vld [vmem:[%s937_s1 + $0xd8] sm:$0xff] (!%p162_p10)  ;;  %v550_v33 = vpack.c.bf16 (!%p162_p10), %v210_v30, %v209_v29  ;;  %v211_v35 = vld [vmem:[%s937_s1 + $0x50] sm:$0xff] (!%p162_p10)  ;;  %v229_v37 = vld [vmem:[%s937_s1 + $0xe0] sm:$0xff] (!%p162_p10) }
  0x16   : > { %s191_s27 = scalar_select %p190_p11, %s692_s15, 1  ;;  %539 = vmatpush3.bf16.msra.mxu0 %v538_v13  ;;  %v552_v34 = vpack.c.bf16 %v228_v32, %v227_v31  ;;  %v212_v36 = vld [vmem:[%s937_s1 + $0x58] sm:$0xff]  ;;  %v230_v38 = vld [vmem:[%s937_s1 + $0xe8] sm:$0xff]  ;;  %v213_v41 = vld [vmem:[%s937_s1 + $0x60] sm:$0xff] }
  0x17   : > { %541 = vmatprep.subr.bf16.mxu0 %v540_v14  ;;  %v554_v39 = vpack.c.bf16 %v212_v36, %v211_v35  ;;  %v556_v40 = vpack.c.bf16 %v230_v38, %v229_v37  ;;  %v214_v42 = vld [vmem:[%s937_s1 + $0x68] sm:$0xff]  ;;  %v231_v43 = vld [vmem:[%s937_s1 + $0xf0] sm:$0xff]  ;;  %v232_v44 = vld [vmem:[%s937_s1 + $0xf8] sm:$0xff]  ;;  %s704_s15 = smov [#allocation2]  }
  0x18   : > { %s489_s30 = sshll.u32 %s191_s27, 3  ;;  %v558_v45 = vpack.c.bf16 %v214_v42, %v213_v41  ;;  %v560_v46 = vpack.c.bf16 %v232_v44, %v231_v43  ;;  %v215_v47 = vld [vmem:[%s937_s1 + $0x70] sm:$0xff]  ;;  %v216_v48 = vld [vmem:[%s937_s1 + $0x78] sm:$0xff]  ;;  %v199_v54 = vld [vmem:[%s938_s2] sm:$0xf]  ;;  %s626_s18 = sshll.u32 %s704_s15, 4  ;;  %s627_s18 = int_to_ptr.vmem [resolvable:$false] %s626_s18 }
  0x19   : > { %s197_s21 = scalar_lea.vmem %s936_s0, %s489_s30  ;;  %v562_v49 = vpack.c.bf16 %v216_v48, %v215_v47  ;;  %s401_s30 = sshll.u32 %s188_s6, 4  ;;  %s891_s30 = int_to_ptr.vmem [resolvable:$true] %s401_s30 }
  0x1a   : > { %v200_v25 = vld [vmem:[%s197_s21] sm:$0xff]  ;;  %543 = vmatpush3.bf16.msra.mxu0 %v542_v19  ;;  %s622_s11 = scalar_lea.vmem %s891_s30, 64  ;;  %s628_s19 = scalar_lea.vmem %s627_s18, 128 }
  0x1b   : > { %v234_v26 = vcombine.high %v200_v25, %v200_v25  ;;  %545 = vmatprep.subr.bf16.mxu0 %v544_v20  ;;  %p623_p12 = scmp.ne.s32.totalorder %s891_s30, %s622_s11  ;;  %p629_p1 = scmp.lt.s32.totalorder %s891_s30, %s627_s18 }
  0x1c   : > { %p630_p2 = scmp.lt.s32.totalorder %s628_s19, %s622_s11 }
  0x1d   : > { %300 = vmatprep.mubr.f32.mxu0 %v234_v26  ;;  %p624_p13 = pnand %p623_p12, %p765_p4 }
  0x1e   : > { %547 = vmatpush3.bf16.msra.mxu0 %v546_v27  ;;  %p631_p3 = por %p630_p2, %p629_p1 }
  0x1f   : > { %549 = vmatprep.subr.bf16.mxu0 %v548_v28  ;;  %p625_p0 = pneg %p624_p13 }
  0x21   : > { %p632_p5 = pnand %p631_p3, %p625_p0 }
  0x22   : > { %551 = vmatpush3.bf16.msra.mxu0 %v550_v33 }
  0x23   : > { %553 = vmatprep.subr.bf16.mxu0 %v552_v34 }
  0x26   : > { %555 = vmatpush3.bf16.msra.mxu0 %v554_v39 }
  0x27   : > { %557 = vmatprep.subr.bf16.mxu0 %v556_v40 }
  0x2a   : > { %559 = vmatpush3.bf16.msra.mxu0 %v558_v45 }
  0x2b   : > { %561 = vmatprep.subr.bf16.mxu0 %v560_v46 }
  0x2e   : > { %563 = vmatpush3.bf16.msra.mxu0 %v562_v49 }
  0x31   : > { %301 = vmatmul.mubr.f32.vlgmr.msra.gmra.mrb[0].mxu0 %v200_v25 }
 0x104   : > { %v522_v51 = vpop.f32.mrb[0].mxu0 }
 0x105   : > { %v523_v52 = vpop.f32.mrb[1].mxu0 }
 0x106   : > { %v524_v53 = vadd.f32 %v523_v52, %v522_v51 }
 0x108   : > { %528 = vmatpush3.msk.msra.mxu1 %vm310_vm1, %v524_v53 }
 0x109   : > { %530 = vmatmul.mubr.msk.f32.vlgmr.msra.gmra.mrb[0].mxu1 %vm306_vm2, %v199_v54 }
 0x1dc   : > { %v380_v55 = vpop.f32.mrb[0].mxu1 }
 0x1dd   : > { %385 = vst.msk [vmem:[%s188_s6] sm:$0xf] %vm384_vm3, %v380_v55  ;;  %v531_v56 = vpop.f32.mrb[1].mxu1 }
 0x1de   : > { %635 = shalt.err (!%p632_p5)
}
 0x1df   : > { %s636_s21 = scalar_lea.hbm %s889_s9, 64  ;;  %s640_s27 = scalar_lea.hbm %s939_s3, 128 }
 0x1e0   : > { %p637_p6 = scmp.ne.s32.totalorder %s889_s9, %s636_s21  ;;  %p641_p10 = scmp.lt.u32.totalorder %s889_s9, %s939_s3 }
 0x1e1   : > { %p642_p11 = scmp.lt.u32.totalorder %s640_s27, %s636_s21  ;;  %p644_p13 = scmp.lt.u32.totalorder %s636_s21, %s889_s9 }
 0x1e2   : > { %p638_p7 = pnand %p637_p6, %p765_p4 }
 0x1e3   : > { %p643_p12 = por %p642_p11, %p641_p10 }
 0x1e4   : > { %p639_p9 = pneg %p638_p7 }
 0x1e5   : > { %p645_p0 = por %p644_p13, %p643_p12 }
 0x1e7   : > { %p646_p1 = pnand %p645_p0, %p639_p9 }
 0x1e9   : > { %649 = shalt.err (!%p646_p1)
}
 0x1ea   : > { %564 = dma.vmem_to_hbm [thread:$0]  (%p765_p4), %s891_s30, 64, %s889_s9, %s387_s10  }
 0x1eb PF: > { %p570_p2 = scmp.ge.s32.totalorder %s700_s17, 2  ;;  %s413_s4 = sand.u32 1, %s680_s12  }
 0x1ec   : > { %s414_s5 = scalar_lea.sflag [#allocation3], %s413_s4 }
 0x1ed   : > { %p567_p3 = pnand %p570_p2, %p772_p8 }
 0x1ef   : > { %675 = dma.done.wait (!%p567_p3), %s414_s5, 64  }
 0x1f0   : > { %677 = vsyncadd (!%p567_p3), %s414_s5, 4294967232  ;;  %s16_s17 = sadd.s32 1, %s700_s17   ;;  %s942_s12 = smov %s684_s13 }
 0x1f1   : > { %p13_p5 = scmp.ge.s32.totalorder %s16_s17, 4   ;;  %s943_s13 = smov %s688_s14 }
 0x1f2   : > { %s944_s14 = smov %s778_s25  ;;  %s945_s15 = smov %s696_s16 }
 0x1f3   : > { %s946_s16 = smov %s948_s20  ;;  %15 = sbr.rel (!%p13_p5) target bundleno = 4 (0x4), region = 67 }
 0x1fa   :  { %419 = vsyncpa [#allocation3], 1 }
 0x1fb   :  { %421 = vsyncpa [#allocation3 + $0x1], 1 }

</bundles_post_ra>
